<compile_context>
chip_gen: v5e
topology: v5e:2x2
jax: 0.10.0
libtpu: 0.0.40
codegen_flags: <defaults>
</compile_context>

<pallas_src>
import functools

import jax
import jax.numpy as jnp
from jax.experimental import pallas as pl
from jax.experimental.pallas import tpu as pltpu

LANE = 128      # lane width (last-dim tiling unit)
SUBLANE = 8     # sublane tiling unit (f32)
NEG = -1e30     # bias for padded logit lanes: exp() underflows to exactly 0


def _pad_to(n, m):
    return ((n + m - 1) // m) * m


# ---------------------------------------------------------------------------
# Fused kernel: per time-chunk
#   Z      = x_chunk @ [Wxh | Wxo] + [b_h | b_o]      (batched, M = Tc*Bp)
#   loop t:
#     ho     = h_prev @ [Whh | Who]                    (only serial matmul)
#     h_new  = Z_h[t] + ho[:, :Hp]
#     logits = Z_o[t] + ho[:, Hp:]
#     out[t] = log_softmax(logits)
# Hidden state lives in a VMEM scratch across chunks; weights are resident.
# ---------------------------------------------------------------------------
def _fused_rnn_kernel(T, Tc, Bp, Hp, Op,
                      x_ref, h0_ref, w_in_ref, b_in_ref, w_h_ref,
                      out_ref, hlast_ref, z_scr, h_state):
    c = pl.program_id(0)

    @pl.when(c == 0)
    def _():
        h_state[...] = h0_ref[...]

    # Batched input projection for the whole chunk (x-FLOPs off the serial path).
    z_scr[...] = (
        jnp.dot(x_ref[...], w_in_ref[...], preferred_element_type=jnp.float32)
        + b_in_ref[...]
    )

    def step(t, h_prev):
        r = pl.multiple_of(t * Bp, Bp)
        zh = z_scr[pl.ds(r, Bp), pl.ds(0, Hp)]
        zo = z_scr[pl.ds(r, Bp), pl.ds(Hp, Op)]

        # Single serial matmul: hidden + output contributions of h_prev.
        ho = jnp.dot(h_prev, w_h_ref[...], preferred_element_type=jnp.float32)
        h_new = zh + ho[:, :Hp]
        logits = zo + ho[:, Hp:]

        m = jnp.max(logits, axis=1, keepdims=True)
        shifted = logits - m
        lse = jnp.log(jnp.sum(jnp.exp(shifted), axis=1, keepdims=True))
        out_ref[pl.ds(r, Bp), :] = (shifted - lse).astype(out_ref.dtype)

        if T % Tc != 0:  # only the last chunk can contain padded (fake) steps
            h_new = jnp.where(c * Tc + t < T, h_new, h_prev)
        return h_new

    h_final = jax.lax.fori_loop(0, Tc, step, h_state[...],
                                unroll=True if Tc <= 16 else False)
    h_state[...] = h_final
    hlast_ref[...] = h_final.astype(hlast_ref.dtype)


def rnn_sequence_forward(xs, h0, w_i2h, b_i2h, w_i2o, b_i2o, *, time_chunk=64):
    """Fused char-RNN forward over a whole sequence.

    xs: (T, B, I), h0: (B, H), w_i2h: (H, I+H), w_i2o: (O, I+H)  (PyTorch layout)
    Returns: log_probs (T, B, O), h_final (B, H).
    Calling with T == 1 is exactly one module.forward() step.
    """
    T, B, I = xs.shape
    H = h0.shape[1]
    O = w_i2o.shape[0]

    Ip, Hp, Op = _pad_to(I, LANE), _pad_to(H, LANE), _pad_to(O, LANE)
    Bp = _pad_to(max(B, SUBLANE), SUBLANE)
    Tc = min(T, time_chunk)
    Tp = _pad_to(T, Tc)
    n_chunks = Tp // Tc
    rows_p = Tp * Bp

    # --- weight prep (once per sequence): split the concat into x- and h-
    # operands, transpose to (in, out), fuse the hidden/output columns side by
    # side, and zero-pad to lane-dense shapes.  Padded hidden lanes stay
    # exactly 0 through the recurrence (zero pads in weights/bias); padded
    # logit lanes carry a -1e30 bias so log_softmax ignores them.
    w_in = jnp.zeros((Ip, Hp + Op), jnp.float32)
    w_in = w_in.at[:I, :H].set(w_i2h[:, :I].T)
    w_in = w_in.at[:I, Hp:Hp + O].set(w_i2o[:, :I].T)

    w_h = jnp.zeros((Hp, Hp + Op), jnp.float32)
    w_h = w_h.at[:H, :H].set(w_i2h[:, I:].T)
    w_h = w_h.at[:H, Hp:Hp + O].set(w_i2o[:, I:].T)

    b_in = jnp.zeros((1, Hp + Op), jnp.float32)
    b_in = b_in.at[0, :H].set(b_i2h)
    b_in = b_in.at[0, Hp:].set(NEG)
    b_in = b_in.at[0, Hp:Hp + O].set(b_i2o)

    xs_p = jnp.zeros((Tp, Bp, Ip), jnp.float32).at[:T, :B, :I].set(xs)
    xs_flat = xs_p.reshape(rows_p, Ip)                 # contiguous -> free
    h0_p = jnp.zeros((Bp, Hp), jnp.float32).at[:B, :H].set(h0)

    cost = pl.CostEstimate(
        flops=2 * rows_p * (Ip + Hp) * (Hp + Op),
        transcendentals=rows_p * (Op + 1),
        bytes_accessed=4 * (rows_p * (Ip + Op)
                            + (Ip + Hp + 1) * (Hp + Op)
                            + 2 * Bp * Hp),
    )

    kernel = functools.partial(_fused_rnn_kernel, T, Tc, Bp, Hp, Op)

    out_flat, h_last = pl.pallas_call(
        kernel,
        out_shape=(
            jax.ShapeDtypeStruct((rows_p, Op), jnp.float32),   # log_softmax rows
            jax.ShapeDtypeStruct((Bp, Hp), jnp.float32),       # final hidden
        ),
        grid=(n_chunks,),
        in_specs=[
            pl.BlockSpec((Tc * Bp, Ip), lambda c: (c, 0)),     # x chunk (streamed)
            pl.BlockSpec((Bp, Hp), lambda c: (0, 0)),          # h0   (resident)
            pl.BlockSpec((Ip, Hp + Op), lambda c: (0, 0)),     # [Wxh|Wxo] (resident)
            pl.BlockSpec((1, Hp + Op), lambda c: (0, 0)),      # [b_h|b_o] (resident)
            pl.BlockSpec((Hp, Hp + Op), lambda c: (0, 0)),     # [Whh|Who] (resident)
        ],
        out_specs=(
            pl.BlockSpec((Tc * Bp, Op), lambda c: (c, 0)),
            pl.BlockSpec((Bp, Hp), lambda c: (0, 0)),
        ),
        scratch_shapes=[
            pltpu.VMEM((Tc * Bp, Hp + Op), jnp.float32),       # Z (chunk projection)
            pltpu.VMEM((Bp, Hp), jnp.float32),                 # hidden carry
        ],
        compiler_params=pltpu.CompilerParams(
            dimension_semantics=("arbitrary",),
            vmem_limit_bytes=32 << 20,
        ),
        cost_estimate=cost,
    )(xs_flat, h0_p, w_in, b_in, w_h)

    log_probs = out_flat.reshape(Tp, Bp, Op)[:T, :B, :O]
    h_final = h_last[:B, :H]
    return log_probs, h_final


def rnn_forward(x, h, w_i2h, b_i2h, w_i2o, b_i2o):
    """Single-step forward with the same signature/semantics as the nn.Module."""
    out, h_new = rnn_sequence_forward(x[None], h, w_i2h, b_i2h, w_i2o, b_i2o)
    return out[0], h_new


def init_linear_params(key, in_features, out_features):
    """Deterministic init matching nn.Linear's uniform(-1/sqrt(fan_in), +)."""
    kw, kb = jax.random.split(key)
    bound = 1.0 / jnp.sqrt(jnp.float32(in_features))
    w = jax.random.uniform(kw, (out_features, in_features), jnp.float32,
                           minval=-bound, maxval=bound)
    b = jax.random.uniform(kb, (out_features,), jnp.float32,
                           minval=-bound, maxval=bound)
    return w, b


if __name__ == "__main__":
    B = 2             # batch
    T = 8             # sequence length (characters)
    INPUT_SIZE = 16
    HIDDEN_SIZE = 32
    OUTPUT_SIZE = 8

    key = jax.random.PRNGKey(0)
    kx, k1, k2 = jax.random.split(key, 3)

    xs = jax.random.normal(kx, (T, B, INPUT_SIZE), jnp.float32)
    hidden0 = jnp.zeros((B, HIDDEN_SIZE), jnp.float32)   # initHidden()

    w_i2h, b_i2h = init_linear_params(k1, INPUT_SIZE + HIDDEN_SIZE, HIDDEN_SIZE)
    w_i2o, b_i2o = init_linear_params(k2, INPUT_SIZE + HIDDEN_SIZE, OUTPUT_SIZE)

    rnn_seq = jax.jit(rnn_sequence_forward)
    log_probs, h_final = rnn_seq(xs, hidden0, w_i2h, b_i2h, w_i2o, b_i2o)
    jax.block_until_ready((log_probs, h_final))

    # --- pure-JAX reference: chain the module's forward() over the sequence ---
    def ref_step(x, h):
        combined = jnp.concatenate([x, h], axis=1)
        h_new = combined @ w_i2h.T + b_i2h
        out = jax.nn.log_softmax(combined @ w_i2o.T + b_i2o, axis=1)
        return out, h_new

    h_ref = hidden0
    outs_ref = []
    for t in range(T):
        o, h_ref = ref_step(xs[t], h_ref)
        outs_ref.append(o)
    outs_ref = jnp.stack(outs_ref)

    assert jnp.allclose(log_probs, outs_ref, atol=1e-4), "log-softmax output mismatch"
    assert jnp.allclose(h_final, h_ref, atol=1e-4), "hidden output mismatch"

    print("KERNEL_OK")
</pallas_src>

<mosaic_0001>
module attributes {stable_mosaic.version = 11 : i64} {
  func.func @_fused_rnn_kernel(%arg0: i32, %arg1: memref<64x128xf32, #tpu.memory_space<vmem>>, %arg2: memref<8x128xf32, #tpu.memory_space<vmem>>, %arg3: memref<128x256xf32, #tpu.memory_space<vmem>>, %arg4: memref<1x256xf32, #tpu.memory_space<vmem>>, %arg5: memref<128x256xf32, #tpu.memory_space<vmem>>, %arg6: memref<64x128xf32, #tpu.memory_space<vmem>>, %arg7: memref<8x128xf32, #tpu.memory_space<vmem>>, %arg8: memref<64x256xf32, #tpu.memory_space<vmem>>, %arg9: memref<8x128xf32, #tpu.memory_space<vmem>>) attributes {dimension_semantics = [#tpu.dimension_semantics<arbitrary>], iteration_bounds = array<i64: 1>, scalar_prefetch = 0 : i64, scratch_operands = 2 : i64, tpu.core_type = #tpu.core_type<tc>, window_params = [{transform_indices = @transform_0, window_bounds = array<i64: 64, 128>}, {pipeline_mode = #tpu.pipeline_mode<synchronous>, transform_indices = @transform_1, window_bounds = array<i64: 8, 128>}, {pipeline_mode = #tpu.pipeline_mode<synchronous>, transform_indices = @transform_2, window_bounds = array<i64: 128, 256>}, {pipeline_mode = #tpu.pipeline_mode<synchronous>, transform_indices = @transform_3, window_bounds = array<i64: 1, 256>}, {pipeline_mode = #tpu.pipeline_mode<synchronous>, transform_indices = @transform_4, window_bounds = array<i64: 128, 256>}, {transform_indices = @transform_5, window_bounds = array<i64: 64, 128>}, {pipeline_mode = #tpu.pipeline_mode<synchronous>, transform_indices = @transform_6, window_bounds = array<i64: 8, 128>}]} {
    %c0_i32 = arith.constant 0 : i32
    %0 = arith.cmpi eq, %arg0, %c0_i32 : i32
    %1 = arith.extui %0 : i1 to i32
    %c0_i32_0 = arith.constant 0 : i32
    %2 = arith.cmpi ne, %1, %c0_i32_0 : i32
    scf.if %2 {
      %c0_86 = arith.constant 0 : index
      %c0_87 = arith.constant 0 : index
      %205 = vector.load %arg2[%c0_86, %c0_87] : memref<8x128xf32, #tpu.memory_space<vmem>>, vector<8x128xf32>
      %c0_88 = arith.constant 0 : index
      %c0_89 = arith.constant 0 : index
      %206 = vector.load %arg9[%c0_88, %c0_89] : memref<8x128xf32, #tpu.memory_space<vmem>>, vector<8x128xf32>
      tpu.vector_store %arg9[%c0_88, %c0_89], %205 {strides = array<i32>} : memref<8x128xf32, #tpu.memory_space<vmem>>, vector<8x128xf32>,
    } else {
    }
    %c0 = arith.constant 0 : index
    %c0_1 = arith.constant 0 : index
    %3 = vector.load %arg1[%c0, %c0_1] : memref<64x128xf32, #tpu.memory_space<vmem>>, vector<64x128xf32>
    %c0_2 = arith.constant 0 : index
    %c0_3 = arith.constant 0 : index
    %4 = vector.load %arg3[%c0_2, %c0_3] : memref<128x256xf32, #tpu.memory_space<vmem>>, vector<128x256xf32>
    %cst = arith.constant dense<0.000000e+00> : vector<64x256xf32>
    %5 = tpu.matmul %3, %4, %cst {dimension_numbers = #tpu.dot_dimension_numbers<[1], [0], [0], [1], [0, 0, 1, 1], [], []>} : vector<64x128xf32>, vector<128x256xf32>, vector<64x256xf32> -> vector<64x256xf32>
    %c0_4 = arith.constant 0 : index
    %c0_5 = arith.constant 0 : index
    %6 = vector.load %arg4[%c0_4, %c0_5] : memref<1x256xf32, #tpu.memory_space<vmem>>, vector<1x256xf32>
    %7 = vector.broadcast %6 : vector<1x256xf32> to vector<64x256xf32>
    %8 = arith.addf %5, %7 : vector<64x256xf32>
    %c0_6 = arith.constant 0 : index
    %c0_7 = arith.constant 0 : index
    %9 = vector.load %arg8[%c0_6, %c0_7] : memref<64x256xf32, #tpu.memory_space<vmem>>, vector<64x256xf32>
    tpu.vector_store %arg8[%c0_6, %c0_7], %8 {strides = array<i32>} : memref<64x256xf32, #tpu.memory_space<vmem>>, vector<64x256xf32>,
    %c0_8 = arith.constant 0 : index
    %c0_9 = arith.constant 0 : index
    %10 = vector.load %arg9[%c0_8, %c0_9] : memref<8x128xf32, #tpu.memory_space<vmem>>, vector<8x128xf32>
    %c0_i32_10 = arith.constant 0 : i32
    %c8_i32 = arith.constant 8 : i32
    %11 = arith.muli %c0_i32_10, %c8_i32 : i32
    %12 = tpu.assume_multiple %11, 8 : i32
    %13 = arith.index_cast %12 : i32 to index
    %c0_11 = arith.constant 0 : index
    %14 = vector.load %arg8[%13, %c0_11] : memref<64x256xf32, #tpu.memory_space<vmem>>, vector<8x128xf32>
    %15 = arith.index_cast %12 : i32 to index
    %c128 = arith.constant 128 : index
    %16 = vector.load %arg8[%15, %c128] : memref<64x256xf32, #tpu.memory_space<vmem>>, vector<8x128xf32>
    %c0_12 = arith.constant 0 : index
    %c0_13 = arith.constant 0 : index
    %17 = vector.load %arg5[%c0_12, %c0_13] : memref<128x256xf32, #tpu.memory_space<vmem>>, vector<128x256xf32>
    %cst_14 = arith.constant dense<0.000000e+00> : vector<8x256xf32>
    %18 = tpu.matmul %10, %17, %cst_14 {dimension_numbers = #tpu.dot_dimension_numbers<[1], [0], [0], [1], [0, 0, 1, 1], [], []>} : vector<8x128xf32>, vector<128x256xf32>, vector<8x256xf32> -> vector<8x256xf32>
    %19 = vector.extract_strided_slice %18 {offsets = [0, 0], sizes = [8, 128], strides = [1, 1]} : vector<8x256xf32> to vector<8x128xf32>
    %20 = arith.addf %14, %19 : vector<8x128xf32>
    %21 = vector.extract_strided_slice %18 {offsets = [0, 128], sizes = [8, 128], strides = [1, 1]} : vector<8x256xf32> to vector<8x128xf32>
    %22 = arith.addf %16, %21 : vector<8x128xf32>
    %cst_15 = arith.constant dense<0xFF800000> : vector<8xf32>
    %23 = vector.multi_reduction <maximumf>, %22, %cst_15 [1] : vector<8x128xf32> to vector<8xf32>
    %24 = vector.shape_cast %23 : vector<8xf32> to vector<8x1xf32>
    %25 = vector.broadcast %24 : vector<8x1xf32> to vector<8x128xf32>
    %26 = arith.subf %22, %25 : vector<8x128xf32>
    %27 = math.exp %26 : vector<8x128xf32>
    %cst_16 = arith.constant dense<0.000000e+00> : vector<8xf32>
    %28 = vector.multi_reduction <add>, %27, %cst_16 [1] : vector<8x128xf32> to vector<8xf32>
    %29 = vector.shape_cast %28 : vector<8xf32> to vector<8x1xf32>
    %30 = math.log %29 : vector<8x1xf32>
    %31 = vector.broadcast %30 : vector<8x1xf32> to vector<8x128xf32>
    %32 = arith.subf %26, %31 : vector<8x128xf32>
    %33 = arith.index_cast %12 : i32 to index
    %c0_17 = arith.constant 0 : index
    %34 = vector.load %arg6[%33, %c0_17] : memref<64x128xf32, #tpu.memory_space<vmem>>, vector<8x128xf32>
    tpu.vector_store %arg6[%33, %c0_17], %32 {strides = array<i32>} : memref<64x128xf32, #tpu.memory_space<vmem>>, vector<8x128xf32>,
    %c1_i32 = arith.constant 1 : i32
    %c8_i32_18 = arith.constant 8 : i32
    %35 = arith.muli %c1_i32, %c8_i32_18 : i32
    %36 = tpu.assume_multiple %35, 8 : i32
    %37 = arith.index_cast %36 : i32 to index
    %c0_19 = arith.constant 0 : index
    %38 = vector.load %arg8[%37, %c0_19] : memref<64x256xf32, #tpu.memory_space<vmem>>, vector<8x128xf32>
    %39 = arith.index_cast %36 : i32 to index
    %c128_20 = arith.constant 128 : index
    %40 = vector.load %arg8[%39, %c128_20] : memref<64x256xf32, #tpu.memory_space<vmem>>, vector<8x128xf32>
    %c0_21 = arith.constant 0 : index
    %c0_22 = arith.constant 0 : index
    %41 = vector.load %arg5[%c0_21, %c0_22] : memref<128x256xf32, #tpu.memory_space<vmem>>, vector<128x256xf32>
    %cst_23 = arith.constant dense<0.000000e+00> : vector<8x256xf32>
    %42 = tpu.matmul %20, %41, %cst_23 {dimension_numbers = #tpu.dot_dimension_numbers<[1], [0], [0], [1], [0, 0, 1, 1], [], []>} : vector<8x128xf32>, vector<128x256xf32>, vector<8x256xf32> -> vector<8x256xf32>
    %43 = vector.extract_strided_slice %42 {offsets = [0, 0], sizes = [8, 128], strides = [1, 1]} : vector<8x256xf32> to vector<8x128xf32>
    %44 = arith.addf %38, %43 : vector<8x128xf32>
    %45 = vector.extract_strided_slice %42 {offsets = [0, 128], sizes = [8, 128], strides = [1, 1]} : vector<8x256xf32> to vector<8x128xf32>
    %46 = arith.addf %40, %45 : vector<8x128xf32>
    %cst_24 = arith.constant dense<0xFF800000> : vector<8xf32>
    %47 = vector.multi_reduction <maximumf>, %46, %cst_24 [1] : vector<8x128xf32> to vector<8xf32>
    %48 = vector.shape_cast %47 : vector<8xf32> to vector<8x1xf32>
    %49 = vector.broadcast %48 : vector<8x1xf32> to vector<8x128xf32>
    %50 = arith.subf %46, %49 : vector<8x128xf32>
    %51 = math.exp %50 : vector<8x128xf32>
    %cst_25 = arith.constant dense<0.000000e+00> : vector<8xf32>
    %52 = vector.multi_reduction <add>, %51, %cst_25 [1] : vector<8x128xf32> to vector<8xf32>
    %53 = vector.shape_cast %52 : vector<8xf32> to vector<8x1xf32>
    %54 = math.log %53 : vector<8x1xf32>
    %55 = vector.broadcast %54 : vector<8x1xf32> to vector<8x128xf32>
    %56 = arith.subf %50, %55 : vector<8x128xf32>
    %57 = arith.index_cast %36 : i32 to index
    %c0_26 = arith.constant 0 : index
    %58 = vector.load %arg6[%57, %c0_26] : memref<64x128xf32, #tpu.memory_space<vmem>>, vector<8x128xf32>
    tpu.vector_store %arg6[%57, %c0_26], %56 {strides = array<i32>} : memref<64x128xf32, #tpu.memory_space<vmem>>, vector<8x128xf32>,
    %c2_i32 = arith.constant 2 : i32
    %c8_i32_27 = arith.constant 8 : i32
    %59 = arith.muli %c2_i32, %c8_i32_27 : i32
    %60 = tpu.assume_multiple %59, 8 : i32
    %61 = arith.index_cast %60 : i32 to index
    %c0_28 = arith.constant 0 : index
    %62 = vector.load %arg8[%61, %c0_28] : memref<64x256xf32, #tpu.memory_space<vmem>>, vector<8x128xf32>
    %63 = arith.index_cast %60 : i32 to index
    %c128_29 = arith.constant 128 : index
    %64 = vector.load %arg8[%63, %c128_29] : memref<64x256xf32, #tpu.memory_space<vmem>>, vector<8x128xf32>
    %c0_30 = arith.constant 0 : index
    %c0_31 = arith.constant 0 : index
    %65 = vector.load %arg5[%c0_30, %c0_31] : memref<128x256xf32, #tpu.memory_space<vmem>>, vector<128x256xf32>
    %cst_32 = arith.constant dense<0.000000e+00> : vector<8x256xf32>
    %66 = tpu.matmul %44, %65, %cst_32 {dimension_numbers = #tpu.dot_dimension_numbers<[1], [0], [0], [1], [0, 0, 1, 1], [], []>} : vector<8x128xf32>, vector<128x256xf32>, vector<8x256xf32> -> vector<8x256xf32>
    %67 = vector.extract_strided_slice %66 {offsets = [0, 0], sizes = [8, 128], strides = [1, 1]} : vector<8x256xf32> to vector<8x128xf32>
    %68 = arith.addf %62, %67 : vector<8x128xf32>
    %69 = vector.extract_strided_slice %66 {offsets = [0, 128], sizes = [8, 128], strides = [1, 1]} : vector<8x256xf32> to vector<8x128xf32>
    %70 = arith.addf %64, %69 : vector<8x128xf32>
    %cst_33 = arith.constant dense<0xFF800000> : vector<8xf32>
    %71 = vector.multi_reduction <maximumf>, %70, %cst_33 [1] : vector<8x128xf32> to vector<8xf32>
    %72 = vector.shape_cast %71 : vector<8xf32> to vector<8x1xf32>
    %73 = vector.broadcast %72 : vector<8x1xf32> to vector<8x128xf32>
    %74 = arith.subf %70, %73 : vector<8x128xf32>
    %75 = math.exp %74 : vector<8x128xf32>
    %cst_34 = arith.constant dense<0.000000e+00> : vector<8xf32>
    %76 = vector.multi_reduction <add>, %75, %cst_34 [1] : vector<8x128xf32> to vector<8xf32>
    %77 = vector.shape_cast %76 : vector<8xf32> to vector<8x1xf32>
    %78 = math.log %77 : vector<8x1xf32>
    %79 = vector.broadcast %78 : vector<8x1xf32> to vector<8x128xf32>
    %80 = arith.subf %74, %79 : vector<8x128xf32>
    %81 = arith.index_cast %60 : i32 to index
    %c0_35 = arith.constant 0 : index
    %82 = vector.load %arg6[%81, %c0_35] : memref<64x128xf32, #tpu.memory_space<vmem>>, vector<8x128xf32>
    tpu.vector_store %arg6[%81, %c0_35], %80 {strides = array<i32>} : memref<64x128xf32, #tpu.memory_space<vmem>>, vector<8x128xf32>,
    %c3_i32 = arith.constant 3 : i32
    %c8_i32_36 = arith.constant 8 : i32
    %83 = arith.muli %c3_i32, %c8_i32_36 : i32
    %84 = tpu.assume_multiple %83, 8 : i32
    %85 = arith.index_cast %84 : i32 to index
    %c0_37 = arith.constant 0 : index
    %86 = vector.load %arg8[%85, %c0_37] : memref<64x256xf32, #tpu.memory_space<vmem>>, vector<8x128xf32>
    %87 = arith.index_cast %84 : i32 to index
    %c128_38 = arith.constant 128 : index
    %88 = vector.load %arg8[%87, %c128_38] : memref<64x256xf32, #tpu.memory_space<vmem>>, vector<8x128xf32>
    %c0_39 = arith.constant 0 : index
    %c0_40 = arith.constant 0 : index
    %89 = vector.load %arg5[%c0_39, %c0_40] : memref<128x256xf32, #tpu.memory_space<vmem>>, vector<128x256xf32>
    %cst_41 = arith.constant dense<0.000000e+00> : vector<8x256xf32>
    %90 = tpu.matmul %68, %89, %cst_41 {dimension_numbers = #tpu.dot_dimension_numbers<[1], [0], [0], [1], [0, 0, 1, 1], [], []>} : vector<8x128xf32>, vector<128x256xf32>, vector<8x256xf32> -> vector<8x256xf32>
    %91 = vector.extract_strided_slice %90 {offsets = [0, 0], sizes = [8, 128], strides = [1, 1]} : vector<8x256xf32> to vector<8x128xf32>
    %92 = arith.addf %86, %91 : vector<8x128xf32>
    %93 = vector.extract_strided_slice %90 {offsets = [0, 128], sizes = [8, 128], strides = [1, 1]} : vector<8x256xf32> to vector<8x128xf32>
    %94 = arith.addf %88, %93 : vector<8x128xf32>
    %cst_42 = arith.constant dense<0xFF800000> : vector<8xf32>
    %95 = vector.multi_reduction <maximumf>, %94, %cst_42 [1] : vector<8x128xf32> to vector<8xf32>
    %96 = vector.shape_cast %95 : vector<8xf32> to vector<8x1xf32>
    %97 = vector.broadcast %96 : vector<8x1xf32> to vector<8x128xf32>
    %98 = arith.subf %94, %97 : vector<8x128xf32>
    %99 = math.exp %98 : vector<8x128xf32>
    %cst_43 = arith.constant dense<0.000000e+00> : vector<8xf32>
    %100 = vector.multi_reduction <add>, %99, %cst_43 [1] : vector<8x128xf32> to vector<8xf32>
    %101 = vector.shape_cast %100 : vector<8xf32> to vector<8x1xf32>
    %102 = math.log %101 : vector<8x1xf32>
    %103 = vector.broadcast %102 : vector<8x1xf32> to vector<8x128xf32>
    %104 = arith.subf %98, %103 : vector<8x128xf32>
    %105 = arith.index_cast %84 : i32 to index
    %c0_44 = arith.constant 0 : index
    %106 = vector.load %arg6[%105, %c0_44] : memref<64x128xf32, #tpu.memory_space<vmem>>, vector<8x128xf32>
    tpu.vector_store %arg6[%105, %c0_44], %104 {strides = array<i32>} : memref<64x128xf32, #tpu.memory_space<vmem>>, vector<8x128xf32>,
    %c4_i32 = arith.constant 4 : i32
    %c8_i32_45 = arith.constant 8 : i32
    %107 = arith.muli %c4_i32, %c8_i32_45 : i32
    %108 = tpu.assume_multiple %107, 8 : i32
    %109 = arith.index_cast %108 : i32 to index
    %c0_46 = arith.constant 0 : index
    %110 = vector.load %arg8[%109, %c0_46] : memref<64x256xf32, #tpu.memory_space<vmem>>, vector<8x128xf32>
    %111 = arith.index_cast %108 : i32 to index
    %c128_47 = arith.constant 128 : index
    %112 = vector.load %arg8[%111, %c128_47] : memref<64x256xf32, #tpu.memory_space<vmem>>, vector<8x128xf32>
    %c0_48 = arith.constant 0 : index
    %c0_49 = arith.constant 0 : index
    %113 = vector.load %arg5[%c0_48, %c0_49] : memref<128x256xf32, #tpu.memory_space<vmem>>, vector<128x256xf32>
    %cst_50 = arith.constant dense<0.000000e+00> : vector<8x256xf32>
    %114 = tpu.matmul %92, %113, %cst_50 {dimension_numbers = #tpu.dot_dimension_numbers<[1], [0], [0], [1], [0, 0, 1, 1], [], []>} : vector<8x128xf32>, vector<128x256xf32>, vector<8x256xf32> -> vector<8x256xf32>
    %115 = vector.extract_strided_slice %114 {offsets = [0, 0], sizes = [8, 128], strides = [1, 1]} : vector<8x256xf32> to vector<8x128xf32>
    %116 = arith.addf %110, %115 : vector<8x128xf32>
    %117 = vector.extract_strided_slice %114 {offsets = [0, 128], sizes = [8, 128], strides = [1, 1]} : vector<8x256xf32> to vector<8x128xf32>
    %118 = arith.addf %112, %117 : vector<8x128xf32>
    %cst_51 = arith.constant dense<0xFF800000> : vector<8xf32>
    %119 = vector.multi_reduction <maximumf>, %118, %cst_51 [1] : vector<8x128xf32> to vector<8xf32>
    %120 = vector.shape_cast %119 : vector<8xf32> to vector<8x1xf32>
    %121 = vector.broadcast %120 : vector<8x1xf32> to vector<8x128xf32>
    %122 = arith.subf %118, %121 : vector<8x128xf32>
    %123 = math.exp %122 : vector<8x128xf32>
    %cst_52 = arith.constant dense<0.000000e+00> : vector<8xf32>
    %124 = vector.multi_reduction <add>, %123, %cst_52 [1] : vector<8x128xf32> to vector<8xf32>
    %125 = vector.shape_cast %124 : vector<8xf32> to vector<8x1xf32>
    %126 = math.log %125 : vector<8x1xf32>
    %127 = vector.broadcast %126 : vector<8x1xf32> to vector<8x128xf32>
    %128 = arith.subf %122, %127 : vector<8x128xf32>
    %129 = arith.index_cast %108 : i32 to index
    %c0_53 = arith.constant 0 : index
    %130 = vector.load %arg6[%129, %c0_53] : memref<64x128xf32, #tpu.memory_space<vmem>>, vector<8x128xf32>
    tpu.vector_store %arg6[%129, %c0_53], %128 {strides = array<i32>} : memref<64x128xf32, #tpu.memory_space<vmem>>, vector<8x128xf32>,
    %c5_i32 = arith.constant 5 : i32
    %c8_i32_54 = arith.constant 8 : i32
    %131 = arith.muli %c5_i32, %c8_i32_54 : i32
    %132 = tpu.assume_multiple %131, 8 : i32
    %133 = arith.index_cast %132 : i32 to index
    %c0_55 = arith.constant 0 : index
    %134 = vector.load %arg8[%133, %c0_55] : memref<64x256xf32, #tpu.memory_space<vmem>>, vector<8x128xf32>
    %135 = arith.index_cast %132 : i32 to index
    %c128_56 = arith.constant 128 : index
    %136 = vector.load %arg8[%135, %c128_56] : memref<64x256xf32, #tpu.memory_space<vmem>>, vector<8x128xf32>
    %c0_57 = arith.constant 0 : index
    %c0_58 = arith.constant 0 : index
    %137 = vector.load %arg5[%c0_57, %c0_58] : memref<128x256xf32, #tpu.memory_space<vmem>>, vector<128x256xf32>
    %cst_59 = arith.constant dense<0.000000e+00> : vector<8x256xf32>
    %138 = tpu.matmul %116, %137, %cst_59 {dimension_numbers = #tpu.dot_dimension_numbers<[1], [0], [0], [1], [0, 0, 1, 1], [], []>} : vector<8x128xf32>, vector<128x256xf32>, vector<8x256xf32> -> vector<8x256xf32>
    %139 = vector.extract_strided_slice %138 {offsets = [0, 0], sizes = [8, 128], strides = [1, 1]} : vector<8x256xf32> to vector<8x128xf32>
    %140 = arith.addf %134, %139 : vector<8x128xf32>
    %141 = vector.extract_strided_slice %138 {offsets = [0, 128], sizes = [8, 128], strides = [1, 1]} : vector<8x256xf32> to vector<8x128xf32>
    %142 = arith.addf %136, %141 : vector<8x128xf32>
    %cst_60 = arith.constant dense<0xFF800000> : vector<8xf32>
    %143 = vector.multi_reduction <maximumf>, %142, %cst_60 [1] : vector<8x128xf32> to vector<8xf32>
    %144 = vector.shape_cast %143 : vector<8xf32> to vector<8x1xf32>
    %145 = vector.broadcast %144 : vector<8x1xf32> to vector<8x128xf32>
    %146 = arith.subf %142, %145 : vector<8x128xf32>
    %147 = math.exp %146 : vector<8x128xf32>
    %cst_61 = arith.constant dense<0.000000e+00> : vector<8xf32>
    %148 = vector.multi_reduction <add>, %147, %cst_61 [1] : vector<8x128xf32> to vector<8xf32>
    %149 = vector.shape_cast %148 : vector<8xf32> to vector<8x1xf32>
    %150 = math.log %149 : vector<8x1xf32>
    %151 = vector.broadcast %150 : vector<8x1xf32> to vector<8x128xf32>
    %152 = arith.subf %146, %151 : vector<8x128xf32>
    %153 = arith.index_cast %132 : i32 to index
    %c0_62 = arith.constant 0 : index
    %154 = vector.load %arg6[%153, %c0_62] : memref<64x128xf32, #tpu.memory_space<vmem>>, vector<8x128xf32>
    tpu.vector_store %arg6[%153, %c0_62], %152 {strides = array<i32>} : memref<64x128xf32, #tpu.memory_space<vmem>>, vector<8x128xf32>,
    %c6_i32 = arith.constant 6 : i32
    %c8_i32_63 = arith.constant 8 : i32
    %155 = arith.muli %c6_i32, %c8_i32_63 : i32
    %156 = tpu.assume_multiple %155, 8 : i32
    %157 = arith.index_cast %156 : i32 to index
    %c0_64 = arith.constant 0 : index
    %158 = vector.load %arg8[%157, %c0_64] : memref<64x256xf32, #tpu.memory_space<vmem>>, vector<8x128xf32>
    %159 = arith.index_cast %156 : i32 to index
    %c128_65 = arith.constant 128 : index
    %160 = vector.load %arg8[%159, %c128_65] : memref<64x256xf32, #tpu.memory_space<vmem>>, vector<8x128xf32>
    %c0_66 = arith.constant 0 : index
    %c0_67 = arith.constant 0 : index
    %161 = vector.load %arg5[%c0_66, %c0_67] : memref<128x256xf32, #tpu.memory_space<vmem>>, vector<128x256xf32>
    %cst_68 = arith.constant dense<0.000000e+00> : vector<8x256xf32>
    %162 = tpu.matmul %140, %161, %cst_68 {dimension_numbers = #tpu.dot_dimension_numbers<[1], [0], [0], [1], [0, 0, 1, 1], [], []>} : vector<8x128xf32>, vector<128x256xf32>, vector<8x256xf32> -> vector<8x256xf32>
    %163 = vector.extract_strided_slice %162 {offsets = [0, 0], sizes = [8, 128], strides = [1, 1]} : vector<8x256xf32> to vector<8x128xf32>
    %164 = arith.addf %158, %163 : vector<8x128xf32>
    %165 = vector.extract_strided_slice %162 {offsets = [0, 128], sizes = [8, 128], strides = [1, 1]} : vector<8x256xf32> to vector<8x128xf32>
    %166 = arith.addf %160, %165 : vector<8x128xf32>
    %cst_69 = arith.constant dense<0xFF800000> : vector<8xf32>
    %167 = vector.multi_reduction <maximumf>, %166, %cst_69 [1] : vector<8x128xf32> to vector<8xf32>
    %168 = vector.shape_cast %167 : vector<8xf32> to vector<8x1xf32>
    %169 = vector.broadcast %168 : vector<8x1xf32> to vector<8x128xf32>
    %170 = arith.subf %166, %169 : vector<8x128xf32>
    %171 = math.exp %170 : vector<8x128xf32>
    %cst_70 = arith.constant dense<0.000000e+00> : vector<8xf32>
    %172 = vector.multi_reduction <add>, %171, %cst_70 [1] : vector<8x128xf32> to vector<8xf32>
    %173 = vector.shape_cast %172 : vector<8xf32> to vector<8x1xf32>
    %174 = math.log %173 : vector<8x1xf32>
    %175 = vector.broadcast %174 : vector<8x1xf32> to vector<8x128xf32>
    %176 = arith.subf %170, %175 : vector<8x128xf32>
    %177 = arith.index_cast %156 : i32 to index
    %c0_71 = arith.constant 0 : index
    %178 = vector.load %arg6[%177, %c0_71] : memref<64x128xf32, #tpu.memory_space<vmem>>, vector<8x128xf32>
    tpu.vector_store %arg6[%177, %c0_71], %176 {strides = array<i32>} : memref<64x128xf32, #tpu.memory_space<vmem>>, vector<8x128xf32>,
    %c7_i32 = arith.constant 7 : i32
    %c8_i32_72 = arith.constant 8 : i32
    %179 = arith.muli %c7_i32, %c8_i32_72 : i32
    %180 = tpu.assume_multiple %179, 8 : i32
    %181 = arith.index_cast %180 : i32 to index
    %c0_73 = arith.constant 0 : index
    %182 = vector.load %arg8[%181, %c0_73] : memref<64x256xf32, #tpu.memory_space<vmem>>, vector<8x128xf32>
    %183 = arith.index_cast %180 : i32 to index
    %c128_74 = arith.constant 128 : index
    %184 = vector.load %arg8[%183, %c128_74] : memref<64x256xf32, #tpu.memory_space<vmem>>, vector<8x128xf32>
    %c0_75 = arith.constant 0 : index
    %c0_76 = arith.constant 0 : index
    %185 = vector.load %arg5[%c0_75, %c0_76] : memref<128x256xf32, #tpu.memory_space<vmem>>, vector<128x256xf32>
    %cst_77 = arith.constant dense<0.000000e+00> : vector<8x256xf32>
    %186 = tpu.matmul %164, %185, %cst_77 {dimension_numbers = #tpu.dot_dimension_numbers<[1], [0], [0], [1], [0, 0, 1, 1], [], []>} : vector<8x128xf32>, vector<128x256xf32>, vector<8x256xf32> -> vector<8x256xf32>
    %187 = vector.extract_strided_slice %186 {offsets = [0, 0], sizes = [8, 128], strides = [1, 1]} : vector<8x256xf32> to vector<8x128xf32>
    %188 = arith.addf %182, %187 : vector<8x128xf32>
    %189 = vector.extract_strided_slice %186 {offsets = [0, 128], sizes = [8, 128], strides = [1, 1]} : vector<8x256xf32> to vector<8x128xf32>
    %190 = arith.addf %184, %189 : vector<8x128xf32>
    %cst_78 = arith.constant dense<0xFF800000> : vector<8xf32>
    %191 = vector.multi_reduction <maximumf>, %190, %cst_78 [1] : vector<8x128xf32> to vector<8xf32>
    %192 = vector.shape_cast %191 : vector<8xf32> to vector<8x1xf32>
    %193 = vector.broadcast %192 : vector<8x1xf32> to vector<8x128xf32>
    %194 = arith.subf %190, %193 : vector<8x128xf32>
    %195 = math.exp %194 : vector<8x128xf32>
    %cst_79 = arith.constant dense<0.000000e+00> : vector<8xf32>
    %196 = vector.multi_reduction <add>, %195, %cst_79 [1] : vector<8x128xf32> to vector<8xf32>
    %197 = vector.shape_cast %196 : vector<8xf32> to vector<8x1xf32>
    %198 = math.log %197 : vector<8x1xf32>
    %199 = vector.broadcast %198 : vector<8x1xf32> to vector<8x128xf32>
    %200 = arith.subf %194, %199 : vector<8x128xf32>
    %201 = arith.index_cast %180 : i32 to index
    %c0_80 = arith.constant 0 : index
    %202 = vector.load %arg6[%201, %c0_80] : memref<64x128xf32, #tpu.memory_space<vmem>>, vector<8x128xf32>
    tpu.vector_store %arg6[%201, %c0_80], %200 {strides = array<i32>} : memref<64x128xf32, #tpu.memory_space<vmem>>, vector<8x128xf32>,
    %c8_i32_81 = arith.constant 8 : i32
    %c0_82 = arith.constant 0 : index
    %c0_83 = arith.constant 0 : index
    %203 = vector.load %arg9[%c0_82, %c0_83] : memref<8x128xf32, #tpu.memory_space<vmem>>, vector<8x128xf32>
    tpu.vector_store %arg9[%c0_82, %c0_83], %188 {strides = array<i32>} : memref<8x128xf32, #tpu.memory_space<vmem>>, vector<8x128xf32>,
    %c0_84 = arith.constant 0 : index
    %c0_85 = arith.constant 0 : index
    %204 = vector.load %arg7[%c0_84, %c0_85] : memref<8x128xf32, #tpu.memory_space<vmem>>, vector<8x128xf32>
    tpu.vector_store %arg7[%c0_84, %c0_85], %188 {strides = array<i32>} : memref<8x128xf32, #tpu.memory_space<vmem>>, vector<8x128xf32>,
    return
  }
  func.func @transform_0(%arg0: i32) -> (i32, i32) {
    %c0_i32 = arith.constant 0 : i32
    %c0_i32_0 = arith.constant 0 : i32
    return %arg0, %c0_i32 : i32, i32
  }
  func.func @transform_1(%arg0: i32) -> (i32, i32) {
    %c0_i32 = arith.constant 0 : i32
    %c0_i32_0 = arith.constant 0 : i32
    %c0_i32_1 = arith.constant 0 : i32
    return %c0_i32, %c0_i32_0 : i32, i32
  }
  func.func @transform_2(%arg0: i32) -> (i32, i32) {
    %c0_i32 = arith.constant 0 : i32
    %c0_i32_0 = arith.constant 0 : i32
    %c0_i32_1 = arith.constant 0 : i32
    return %c0_i32, %c0_i32_0 : i32, i32
  }
  func.func @transform_3(%arg0: i32) -> (i32, i32) {
    %c0_i32 = arith.constant 0 : i32
    %c0_i32_0 = arith.constant 0 : i32
    %c0_i32_1 = arith.constant 0 : i32
    return %c0_i32, %c0_i32_0 : i32, i32
  }
  func.func @transform_4(%arg0: i32) -> (i32, i32) {
    %c0_i32 = arith.constant 0 : i32
    %c0_i32_0 = arith.constant 0 : i32
    %c0_i32_1 = arith.constant 0 : i32
    return %c0_i32, %c0_i32_0 : i32, i32
  }
  func.func @transform_5(%arg0: i32) -> (i32, i32) {
    %c0_i32 = arith.constant 0 : i32
    %c0_i32_0 = arith.constant 0 : i32
    return %arg0, %c0_i32 : i32, i32
  }
  func.func @transform_6(%arg0: i32) -> (i32, i32) {
    %c0_i32 = arith.constant 0 : i32
    %c0_i32_0 = arith.constant 0 : i32
    %c0_i32_1 = arith.constant 0 : i32
    return %c0_i32, %c0_i32_0 : i32, i32
  }
}

</mosaic_0001>

<bundles_post_ra>
// kernel: rnn_sequence_forward.1
= control target key start
LH: loop header
LB: loop body
LE: loop exit
PB: predicated region body
PF: predicated region fallthrough
CT: control target
= control target key end

     0   :  { %s1692_s4 = inlined_call_operand.vmem [shape: f32[128,256], index: 4, kind: input, shape index: {}]   ;;  %s1693_s2 = inlined_call_operand.vmem [shape: f32[128,256], index: 2, kind: input, shape index: {}]   ;;  %s1694_s1 = inlined_call_operand.vmem [shape: f32[8,128], index: 1, kind: input, shape index: {}]   ;;  %s1695_s0 = inlined_call_operand.vmem [shape: f32[64,128], index: 0, kind: input, shape index: {}]   ;;  %s1696_s3 = inlined_call_operand.vmem [shape: f32[1,256], index: 3, kind: input, shape index: {}]   ;;  %s1697_s5 = inlined_call_operand.vmem [shape: f32[64,128], index: 5, kind: output, shape index: {0}]   ;;  %s1698_s6 = inlined_call_operand.vmem [shape: f32[8,128], index: 6, kind: output, shape index: {1}]  }
   0x1   :  { %v994_v0 = vld [vmem:[%s1692_s4 + $0xf0] sm:$0xff]  ;;  %v999_v1 = vld [vmem:[%s1692_s4 + $0xe0] sm:$0xff]  ;;  %v1056_v14 = vld [vmem:[%s1692_s4 + $0xf8] sm:$0xff] }
   0x2   :  { %v66_v2 = vld [vmem:[%s1693_s2 + $0xf0] sm:$0xff]  ;;  %210 = vmatpush.msra.mxu2 %v994_v0  ;;  %v64_v3 = vld [vmem:[%s1693_s2 + $0xe0] sm:$0xff]  ;;  %v1061_v15 = vld [vmem:[%s1692_s4 + $0xe8] sm:$0xff]  ;;  %230 = vmatpush.msra.mxu3 %v1056_v14 }
   0x3   :  { %74 = vmatpush.msra.mxu0 %v66_v2  ;;  %v1011_v4 = vld [vmem:[%s1692_s4 + $0xd0] sm:$0xff]  ;;  %v1020_v6 = vld [vmem:[%s1692_s4 + $0xc0] sm:$0xff]  ;;  %v1076_v18 = vld [vmem:[%s1692_s4 + $0xd8] sm:$0xff] }
   0x4   :  { %v62_v5 = vld [vmem:[%s1693_s2 + $0xd0] sm:$0xff]  ;;  %211 = vmatpush.msra.mxu2 %v999_v1  ;;  %v60_v7 = vld [vmem:[%s1693_s2 + $0xc0] sm:$0xff]  ;;  %231 = vmatpush.msra.mxu3 %v1061_v15  ;;  %v1091_v21 = vld [vmem:[%s1692_s4 + $0xc8] sm:$0xff] }
   0x5   :  { %75 = vmatpush.msra.mxu0 %v64_v3  ;;  %v1029_v8 = vld [vmem:[%s1692_s4 + $0xb0] sm:$0xff]  ;;  %v1038_v10 = vld [vmem:[%s1692_s4 + $0xa0] sm:$0xff]  ;;  %v67_v24 = vld [vmem:[%s1693_s2 + $0xf8] sm:$0xff] }
   0x6   :  { %212 = vmatpush.msra.mxu2 %v1011_v4  ;;  %v58_v9 = vld [vmem:[%s1693_s2 + $0xb0] sm:$0xff]  ;;  %v56_v11 = vld [vmem:[%s1693_s2 + $0xa0] sm:$0xff]  ;;  %232 = vmatpush.msra.mxu3 %v1076_v18  ;;  %v1109_v25 = vld [vmem:[%s1692_s4 + $0xb8] sm:$0xff] }
   0x7   :  { %76 = vmatpush.msra.mxu0 %v62_v5  ;;  %v1047_v12 = vld [vmem:[%s1692_s4 + $0x90] sm:$0xff]  ;;  %v1066_v16 = vld [vmem:[%s1692_s4 + $0x80] sm:$0xff]  ;;  %v65_v26 = vld [vmem:[%s1693_s2 + $0xe8] sm:$0xff]  ;;  %115 = vmatpush.msra.mxu1 %v67_v24 }
   0x8   :  { %213 = vmatpush.msra.mxu2 %v1020_v6  ;;  %v54_v13 = vld [vmem:[%s1693_s2 + $0x90] sm:$0xff]  ;;  %v52_v17 = vld [vmem:[%s1693_s2 + $0x80] sm:$0xff]  ;;  %233 = vmatpush.msra.mxu3 %v1091_v21  ;;  %v1127_v29 = vld [vmem:[%s1692_s4 + $0xa8] sm:$0xff] }
   0x9   :  { %77 = vmatpush.msra.mxu0 %v60_v7  ;;  %v1081_v19 = vld [vmem:[%s1692_s4 + $0x70] sm:$0xff]  ;;  %v1096_v22 = vld [vmem:[%s1692_s4 + $0x60] sm:$0xff]  ;;  %v63_v30 = vld [vmem:[%s1693_s2 + $0xd8] sm:$0xff]  ;;  %116 = vmatpush.msra.mxu1 %v65_v26 }
   0xa   :  { %214 = vmatpush.msra.mxu2 %v1029_v8  ;;  %v50_v20 = vld [vmem:[%s1693_s2 + $0x70] sm:$0xff]  ;;  %v48_v23 = vld [vmem:[%s1693_s2 + $0x60] sm:$0xff]  ;;  %234 = vmatpush.msra.mxu3 %v1109_v25  ;;  %v1145_v33 = vld [vmem:[%s1692_s4 + $0x98] sm:$0xff] }
   0xb   :  { %78 = vmatpush.msra.mxu0 %v58_v9  ;;  %v1117_v27 = vld [vmem:[%s1692_s4 + $0x50] sm:$0xff]  ;;  %v1135_v31 = vld [vmem:[%s1692_s4 + $0x40] sm:$0xff]  ;;  %v61_v34 = vld [vmem:[%s1693_s2 + $0xc8] sm:$0xff]  ;;  %117 = vmatpush.msra.mxu1 %v63_v30 }
   0xc   :  { %215 = vmatpush.msra.mxu2 %v1038_v10  ;;  %v46_v28 = vld [vmem:[%s1693_s2 + $0x50] sm:$0xff]  ;;  %v44_v32 = vld [vmem:[%s1693_s2 + $0x40] sm:$0xff]  ;;  %235 = vmatpush.msra.mxu3 %v1127_v29  ;;  %v1163_v37 = vld [vmem:[%s1692_s4 + $0x88] sm:$0xff] }
   0xd   :  { %79 = vmatpush.msra.mxu0 %v56_v11  ;;  %v1153_v35 = vld [vmem:[%s1692_s4 + $0x30] sm:$0xff]  ;;  %v59_v38 = vld [vmem:[%s1693_s2 + $0xb8] sm:$0xff]  ;;  %v1171_v39 = vld [vmem:[%s1692_s4 + $0x20] sm:$0xff]  ;;  %118 = vmatpush.msra.mxu1 %v61_v34 }
   0xe   :  { %216 = vmatpush.msra.mxu2 %v1047_v12  ;;  %v42_v36 = vld [vmem:[%s1693_s2 + $0x30] sm:$0xff]  ;;  %v40_v40 = vld [vmem:[%s1693_s2 + $0x20] sm:$0xff]  ;;  %236 = vmatpush.msra.mxu3 %v1145_v33  ;;  %v1181_v41 = vld [vmem:[%s1692_s4 + $0x78] sm:$0xff] }
   0xf   :  { %80 = vmatpush.msra.mxu0 %v54_v13  ;;  %v57_v42 = vld [vmem:[%s1693_s2 + $0xa8] sm:$0xff]  ;;  %v1189_v43 = vld [vmem:[%s1692_s4 + $0x10] sm:$0xff]  ;;  %119 = vmatpush.msra.mxu1 %v59_v38  ;;  %v55_v46 = vld [vmem:[%s1693_s2 + $0x98] sm:$0xff] }
  0x10   :  { %217 = vmatpush.msra.mxu2 %v1066_v16  ;;  %v38_v44 = vld [vmem:[%s1693_s2 + $0x10] sm:$0xff]  ;;  %237 = vmatpush.msra.mxu3 %v1163_v37  ;;  %v1199_v45 = vld [vmem:[%s1692_s4 + $0x68] sm:$0xff]  ;;  %v1207_v47 = vld [vmem:[%s1692_s4] sm:$0xff] }
  0x11   :  { %81 = vmatpush.msra.mxu0 %v52_v17  ;;  %v36_v48 = vld [vmem:[%s1693_s2] sm:$0xff]  ;;  %120 = vmatpush.msra.mxu1 %v57_v42  ;;  %v1226_v51 = vld [vmem:[%s1692_s4 + $0x58] sm:$0xff]  ;;  %v53_v52 = vld [vmem:[%s1693_s2 + $0x88] sm:$0xff] }
  0x12   :  { %218 = vmatpush.msra.mxu2 %v1081_v19  ;;  %238 = vmatpush.msra.mxu3 %v1181_v41  ;;  %v26_v49 = vld [vmem:[%s1694_s1] sm:$0xff]  ;;  %v1236_v53 = vld [vmem:[%s1692_s4 + $0x48] sm:$0xff]  ;;  %v51_v54 = vld [vmem:[%s1693_s2 + $0x78] sm:$0xff] }
  0x13   :  { %82 = vmatpush.msra.mxu0 %v50_v20  ;;  %v1220_v50 = vld [vmem:[%s1695_s0] sm:$0xff]  ;;  %121 = vmatpush.msra.mxu1 %v55_v46  ;;  %v1246_v55 = vld [vmem:[%s1692_s4 + $0x38] sm:$0xff]  ;;  %v49_v56 = vld [vmem:[%s1693_s2 + $0x68] sm:$0xff] }
  0x14   :  { %219 = vmatpush.msra.mxu2 %v1096_v22  ;;  %239 = vmatpush.msra.mxu3 %v1199_v45  ;;  %v1257_v57 = vld [vmem:[%s1692_s4 + $0x28] sm:$0xff]  ;;  %v47_v58 = vld [vmem:[%s1693_s2 + $0x58] sm:$0xff]  ;;  %v30_v7 = vld [vmem:[%s1695_s0 + $0x10] sm:$0xff] }
  0x15   :  { %83 = vmatpush.msra.mxu0 %v48_v23  ;;  %122 = vmatpush.msra.mxu1 %v53_v52  ;;  %v1268_v59 = vld [vmem:[%s1692_s4 + $0x18] sm:$0xff]  ;;  %v45_v60 = vld [vmem:[%s1693_s2 + $0x48] sm:$0xff]  ;;  %v1409_v11 = vld [vmem:[%s1696_s3] sm:$0x3] }
  0x16   :  { %220 = vmatpush.msra.mxu2 %v1117_v27  ;;  %240 = vmatpush.msra.mxu3 %v1226_v51  ;;  %v1279_v61 = vld [vmem:[%s1692_s4 + $0x8] sm:$0xff]  ;;  %v43_v62 = vld [vmem:[%s1693_s2 + $0x38] sm:$0xff]  ;;  %v1414_v13 = vperm.slane %v1409_v11, 0  ;;  %v32_v17 = vld [vmem:[%s1695_s0 + $0x20] sm:$0xff] }
  0x17   :  { %84 = vmatpush.msra.mxu0 %v46_v28  ;;  %123 = vmatpush.msra.mxu1 %v51_v54  ;;  %v41_v63 = vld [vmem:[%s1693_s2 + $0x28] sm:$0xff]  ;;  %v39_v2 = vld [vmem:[%s1693_s2 + $0x18] sm:$0xff]  ;;  %v34_v30 = vld [vmem:[%s1695_s0 + $0x30] sm:$0xff] }
  0x18   :  { %221 = vmatpush.msra.mxu2 %v1135_v31  ;;  %241 = vmatpush.msra.mxu3 %v1236_v53  ;;  %v37_v3 = vld [vmem:[%s1693_s2 + $0x8] sm:$0xff]  ;;  %v31_v9 = vld [vmem:[%s1695_s0 + $0x18] sm:$0xff]  ;;  %v753_v52 = vld [vmem:[%s1692_s4 + $0xf0] sm:$0xff] }
  0x19   :  { %85 = vmatpush.msra.mxu0 %v44_v32  ;;  %124 = vmatpush.msra.mxu1 %v49_v56  ;;  %v29_v5 = vld [vmem:[%s1695_s0 + $0x8] sm:$0xff]  ;;  %v749_v54 = vld [vmem:[%s1692_s4 + $0xd0] sm:$0xff] }
  0x1a   :  { %222 = vmatpush.msra.mxu2 %v1153_v35  ;;  %242 = vmatpush.msra.mxu3 %v1246_v55  ;;  %v33_v28 = vld [vmem:[%s1695_s0 + $0x28] sm:$0xff]  ;;  %v745_v56 = vld [vmem:[%s1692_s4 + $0xb0] sm:$0xff] }
  0x1b   :  { %86 = vmatpush.msra.mxu0 %v42_v36  ;;  %125 = vmatpush.msra.mxu1 %v47_v58  ;;  %v741_v58 = vld [vmem:[%s1692_s4 + $0x90] sm:$0xff] }
  0x1c   :  { %223 = vmatpush.msra.mxu2 %v1171_v39  ;;  %243 = vmatpush.msra.mxu3 %v1257_v57 }
  0x1d   :  { %87 = vmatpush.msra.mxu0 %v40_v40  ;;  %126 = vmatpush.msra.mxu1 %v45_v60 }
  0x1e   :  { %224 = vmatpush.msra.mxu2 %v1189_v43  ;;  %244 = vmatpush.msra.mxu3 %v1268_v59 }
  0x1f   :  { %88 = vmatpush.msra.mxu0 %v38_v44  ;;  %127 = vmatpush.msra.mxu1 %v43_v62 }
  0x20   :  { %225 = vmatpush.msra.mxu2 %v1207_v47  ;;  %245 = vmatpush.msra.mxu3 %v1279_v61 }
  0x21   :  { %89 = vmatpush.msra.mxu0 %v36_v48  ;;  %226 = vmatmul.f32.vlgmr.msra.gmra.mxu2 %v26_v49 }
  0x22   :  { %90 = vmatmul.f32.vlgmr.msra.gmra.mxu0 %v1220_v50  ;;  %300 = vmatpush.msrb.mxu2 %v994_v0 }
  0x23   :  { %391 = vmatpush.msrb.mxu0 %v994_v0  ;;  %320 = vmatpush.msrb.mxu3 %v1056_v14 }
  0x24   :  { %301 = vmatpush.msrb.mxu2 %v999_v1  ;;  %246 = vmatmul.f32.vlgmr.msra.gmra.mxu3 %v26_v49 }
  0x25   :  { %392 = vmatpush.msrb.mxu0 %v999_v1  ;;  %321 = vmatpush.msrb.mxu3 %v1061_v15 }
  0x26   :  { %302 = vmatpush.msrb.mxu2 %v1011_v4  ;;  %128 = vmatpush.msra.mxu1 %v41_v63 }
  0x27   :  { %393 = vmatpush.msrb.mxu0 %v1011_v4  ;;  %322 = vmatpush.msrb.mxu3 %v1076_v18 }
  0x28   :  { %303 = vmatpush.msrb.mxu2 %v1020_v6  ;;  %129 = vmatpush.msra.mxu1 %v39_v2 }
  0x29   :  { %394 = vmatpush.msrb.mxu0 %v1020_v6  ;;  %323 = vmatpush.msrb.mxu3 %v1091_v21 }
  0x2a   :  { %304 = vmatpush.msrb.mxu2 %v1029_v8  ;;  %130 = vmatpush.msra.mxu1 %v37_v3  ;;  %v739_v3 = vld [vmem:[%s1692_s4 + $0x80] sm:$0xff] }
  0x2b   :  { %395 = vmatpush.msrb.mxu0 %v1029_v8  ;;  %324 = vmatpush.msrb.mxu3 %v1109_v25 }
  0x2c   :  { %305 = vmatpush.msrb.mxu2 %v1038_v10  ;;  %131 = vmatmul.f32.vlgmr.msra.gmra.mxu1 %v1220_v50 }
  0x2d   :  { %396 = vmatpush.msrb.mxu0 %v1038_v10  ;;  %325 = vmatpush.msrb.mxu3 %v1127_v29 }
  0x2e   :  { %306 = vmatpush.msrb.mxu2 %v1047_v12  ;;  %411 = vmatpush.msrb.mxu1 %v1056_v14 }
  0x2f   :  { %397 = vmatpush.msrb.mxu0 %v1047_v12  ;;  %326 = vmatpush.msrb.mxu3 %v1145_v33 }
  0x30   :  { %307 = vmatpush.msrb.mxu2 %v1066_v16  ;;  %412 = vmatpush.msrb.mxu1 %v1061_v15 }
  0x31   :  { %398 = vmatpush.msrb.mxu0 %v1066_v16  ;;  %327 = vmatpush.msrb.mxu3 %v1163_v37 }
  0x32   :  { %308 = vmatpush.msrb.mxu2 %v1081_v19  ;;  %413 = vmatpush.msrb.mxu1 %v1076_v18 }
  0x33   :  { %399 = vmatpush.msrb.mxu0 %v1081_v19  ;;  %328 = vmatpush.msrb.mxu3 %v1181_v41 }
  0x34   :  { %309 = vmatpush.msrb.mxu2 %v1096_v22  ;;  %93 = vmatmul.f32.gmra.mxu0 %v29_v5 }
  0x35   :  { %400 = vmatpush.msrb.mxu0 %v1096_v22  ;;  %329 = vmatpush.msrb.mxu3 %v1199_v45 }
  0x36   :  { %310 = vmatpush.msrb.mxu2 %v1117_v27  ;;  %414 = vmatpush.msrb.mxu1 %v1091_v21 }
  0x37   :  { %401 = vmatpush.msrb.mxu0 %v1117_v27  ;;  %330 = vmatpush.msrb.mxu3 %v1226_v51 }
  0x38   :  { %311 = vmatpush.msrb.mxu2 %v1135_v31  ;;  %134 = vmatmul.f32.gmra.mxu1 %v29_v5  ;;  %v1552_v5 = vld [vmem:[%s1692_s4 + $0x88] sm:$0xff] }
  0x39   :  { %402 = vmatpush.msrb.mxu0 %v1135_v31  ;;  %331 = vmatpush.msrb.mxu3 %v1236_v53 }
  0x3a   :  { %312 = vmatpush.msrb.mxu2 %v1153_v35  ;;  %415 = vmatpush.msrb.mxu1 %v1109_v25 }
  0x3b   :  { %403 = vmatpush.msrb.mxu0 %v1153_v35  ;;  %332 = vmatpush.msrb.mxu3 %v1246_v55 }
  0x3c   :  { %313 = vmatpush.msrb.mxu2 %v1171_v39  ;;  %416 = vmatpush.msrb.mxu1 %v1127_v29 }
  0x3d   :  { %404 = vmatpush.msrb.mxu0 %v1171_v39  ;;  %333 = vmatpush.msrb.mxu3 %v1257_v57 }
  0x3e   :  { %314 = vmatpush.msrb.mxu2 %v1189_v43  ;;  %417 = vmatpush.msrb.mxu1 %v1145_v33 }
  0x3f   :  { %405 = vmatpush.msrb.mxu0 %v1189_v43  ;;  %334 = vmatpush.msrb.mxu3 %v1268_v59 }
  0x40   :  { %315 = vmatpush.msrb.mxu2 %v1207_v47  ;;  %96 = vmatmul.f32.gmra.mxu0 %v30_v7 }
  0x41   :  { %406 = vmatpush.msrb.mxu0 %v1207_v47  ;;  %335 = vmatpush.msrb.mxu3 %v1279_v61 }
  0x42   :  { %482 = vmatpush.msra.mxu2 %v994_v0  ;;  %418 = vmatpush.msrb.mxu1 %v1163_v37 }
  0x43   :  { %573 = vmatpush.msra.mxu0 %v994_v0  ;;  %502 = vmatpush.msra.mxu3 %v1056_v14 }
  0x44   :  { %483 = vmatpush.msra.mxu2 %v999_v1  ;;  %137 = vmatmul.f32.gmra.mxu1 %v30_v7  ;;  %v737_v7 = vld [vmem:[%s1692_s4 + $0x70] sm:$0xff] }
  0x45   :  { %574 = vmatpush.msra.mxu0 %v999_v1  ;;  %503 = vmatpush.msra.mxu3 %v1061_v15 }
  0x46   :  { %484 = vmatpush.msra.mxu2 %v1011_v4  ;;  %419 = vmatpush.msrb.mxu1 %v1181_v41 }
  0x47   :  { %575 = vmatpush.msra.mxu0 %v1011_v4  ;;  %504 = vmatpush.msra.mxu3 %v1076_v18 }
  0x48   :  { %485 = vmatpush.msra.mxu2 %v1020_v6  ;;  %420 = vmatpush.msrb.mxu1 %v1199_v45 }
  0x49   :  { %576 = vmatpush.msra.mxu0 %v1020_v6  ;;  %505 = vmatpush.msra.mxu3 %v1091_v21 }
  0x4a   :  { %486 = vmatpush.msra.mxu2 %v1029_v8  ;;  %421 = vmatpush.msrb.mxu1 %v1226_v51 }
  0x4b   :  { %577 = vmatpush.msra.mxu0 %v1029_v8  ;;  %506 = vmatpush.msra.mxu3 %v1109_v25 }
  0x4c   :  { %487 = vmatpush.msra.mxu2 %v1038_v10  ;;  %99 = vmatmul.f32.gmra.mxu0 %v31_v9 }
  0x4d   :  { %578 = vmatpush.msra.mxu0 %v1038_v10  ;;  %507 = vmatpush.msra.mxu3 %v1127_v29 }
  0x4e   :  { %488 = vmatpush.msra.mxu2 %v1047_v12  ;;  %422 = vmatpush.msrb.mxu1 %v1236_v53 }
  0x4f   :  { %579 = vmatpush.msra.mxu0 %v1047_v12  ;;  %508 = vmatpush.msra.mxu3 %v1145_v33 }
  0x50   :  { %489 = vmatpush.msra.mxu2 %v1066_v16  ;;  %140 = vmatmul.f32.gmra.mxu1 %v31_v9  ;;  %v1561_v9 = vld [vmem:[%s1692_s4 + $0x78] sm:$0xff] }
  0x51   :  { %580 = vmatpush.msra.mxu0 %v1066_v16  ;;  %509 = vmatpush.msra.mxu3 %v1163_v37 }
  0x52   :  { %490 = vmatpush.msra.mxu2 %v1081_v19  ;;  %423 = vmatpush.msrb.mxu1 %v1246_v55 }
  0x53   :  { %581 = vmatpush.msra.mxu0 %v1081_v19  ;;  %510 = vmatpush.msra.mxu3 %v1181_v41 }
  0x54   :  { %491 = vmatpush.msra.mxu2 %v1096_v22  ;;  %424 = vmatpush.msrb.mxu1 %v1257_v57 }
  0x55   :  { %582 = vmatpush.msra.mxu0 %v1096_v22  ;;  %511 = vmatpush.msra.mxu3 %v1199_v45 }
  0x56   :  { %492 = vmatpush.msra.mxu2 %v1117_v27  ;;  %425 = vmatpush.msrb.mxu1 %v1268_v59 }
  0x57   :  { %583 = vmatpush.msra.mxu0 %v1117_v27  ;;  %512 = vmatpush.msra.mxu3 %v1226_v51 }
  0x58   :  { %493 = vmatpush.msra.mxu2 %v1135_v31  ;;  %102 = vmatmul.f32.gmra.mxu0 %v32_v17 }
  0x59   :  { %584 = vmatpush.msra.mxu0 %v1135_v31  ;;  %513 = vmatpush.msra.mxu3 %v1236_v53 }
  0x5a   :  { %494 = vmatpush.msra.mxu2 %v1153_v35  ;;  %426 = vmatpush.msrb.mxu1 %v1279_v61 }
  0x5b   :  { %585 = vmatpush.msra.mxu0 %v1153_v35  ;;  %514 = vmatpush.msra.mxu3 %v1246_v55 }
  0x5c   :  { %495 = vmatpush.msra.mxu2 %v1171_v39  ;;  %143 = vmatmul.f32.gmra.mxu1 %v32_v17  ;;  %v1570_v17 = vld [vmem:[%s1692_s4 + $0x68] sm:$0xff] }
  0x5d   :  { %586 = vmatpush.msra.mxu0 %v1171_v39  ;;  %515 = vmatpush.msra.mxu3 %v1257_v57 }
  0x5e   :  { %496 = vmatpush.msra.mxu2 %v1189_v43  ;;  %593 = vmatpush.msra.mxu1 %v1056_v14 }
  0x5f   :  { %587 = vmatpush.msra.mxu0 %v1189_v43  ;;  %516 = vmatpush.msra.mxu3 %v1268_v59 }
  0x60   :  { %497 = vmatpush.msra.mxu2 %v1207_v47  ;;  %594 = vmatpush.msra.mxu1 %v1061_v15 }
  0x61   :  { %588 = vmatpush.msra.mxu0 %v1207_v47  ;;  %517 = vmatpush.msra.mxu3 %v1279_v61 }
  0x62   :  { %595 = vmatpush.msra.mxu1 %v1076_v18  ;;  %105 = vmatmul.f32.gmra.mxu0 %v33_v28 }
  0x64   :  { %596 = vmatpush.msra.mxu1 %v1091_v21 }
  0x65   :  { %146 = vmatmul.f32.gmra.mxu1 %v33_v28  ;;  %v729_v28 = vld [vmem:[%s1692_s4 + $0x30] sm:$0xff] }
  0x66   :  { %597 = vmatpush.msra.mxu1 %v1109_v25 }
  0x68   :  { %598 = vmatpush.msra.mxu1 %v1127_v29 }
  0x6a   :  { %599 = vmatpush.msra.mxu1 %v1145_v33  ;;  %108 = vmatmul.f32.gmra.mxu0 %v34_v30 }
  0x6c   :  { %600 = vmatpush.msra.mxu1 %v1163_v37 }
  0x6d   :  { %149 = vmatmul.f32.gmra.mxu1 %v34_v30  ;;  %v730_v30 = vld [vmem:[%s1692_s4 + $0x38] sm:$0xff] }
  0x6e   :  { %601 = vmatpush.msra.mxu1 %v1181_v41 }
  0x70   :  { %602 = vmatpush.msra.mxu1 %v1199_v45 }
  0x72   :  { %603 = vmatpush.msra.mxu1 %v1226_v51 }
  0x74   :  { %604 = vmatpush.msra.mxu1 %v1236_v53 }
  0x76   :  { %605 = vmatpush.msra.mxu1 %v1246_v55 }
  0x78   :  { %606 = vmatpush.msra.mxu1 %v1257_v57 }
  0x7a   :  { %607 = vmatpush.msra.mxu1 %v1268_v59 }
  0x7c   :  { %608 = vmatpush.msra.mxu1 %v1279_v61 }
  0x9f   :  { %v91_v20 = vpop.f32.mrf.mxu0 }
  0xa0   :  { %v92_v23 = vadd.f32 %v91_v20, %v1414_v13  ;;  %v733_v20 = vld [vmem:[%s1692_s4 + $0x50] sm:$0xff] }
  0xa4   :  { %v227_v24 = vpop.f32.mrf.mxu2 }
  0xa5   :  { %v250_v26 = vadd.f32 %v227_v24, %v92_v23  ;;  %v1579_v23 = vld [vmem:[%s1692_s4 + $0x58] sm:$0xff]  ;;  %v731_v24 = vld [vmem:[%s1692_s4 + $0x40] sm:$0xff] }
  0xa7   :  { %316 = vmatmul.f32.vlgmr.msrb.gmra.mxu2 %v250_v26  ;;  %336 = vmatmul.f32.vlgmr.msrb.gmra.mxu3 %v250_v26  ;;  %v1587_v26 = vld [vmem:[%s1692_s4 + $0x48] sm:$0xff] }
  0xa8   :  { %664 = vmatpush.msrb.mxu2 %v994_v0  ;;  %684 = vmatpush.msrb.mxu3 %v1056_v14  ;;  %v35_v0 = vld [vmem:[%s1695_s0 + $0x38] sm:$0xff] }
  0xa9   :  { %152 = vmatmul.f32.gmra.mxu1 %v35_v0  ;;  %111 = vmatmul.f32.gmra.mxu0 %v35_v0  ;;  %v727_v0 = vld [vmem:[%s1692_s4 + $0x20] sm:$0xff] }
  0xaa   :  { %665 = vmatpush.msrb.mxu2 %v999_v1  ;;  %685 = vmatpush.msrb.mxu3 %v1061_v15  ;;  %v1480_v1 = vperm.slane %v1409_v11, 1  ;;  %v735_v11 = vld [vmem:[%s1692_s4 + $0x60] sm:$0xff] }
  0xac   :  { %666 = vmatpush.msrb.mxu2 %v1011_v4  ;;  %686 = vmatpush.msrb.mxu3 %v1076_v18  ;;  %v132_v4 = vpop.f32.mrf.mxu1 }
  0xae   :  { %667 = vmatpush.msrb.mxu2 %v1020_v6  ;;  %687 = vmatpush.msrb.mxu3 %v1091_v21  ;;  %v247_v6 = vpop.f32.mrf.mxu3 }
  0xb0   :  { %668 = vmatpush.msrb.mxu2 %v1029_v8  ;;  %688 = vmatpush.msrb.mxu3 %v1109_v25  ;;  %v133_v8 = vadd.f32 %v132_v4, %v1480_v1  ;;  %v728_v4 = vld [vmem:[%s1692_s4 + $0x28] sm:$0xff] }
  0xb2   :  { %669 = vmatpush.msrb.mxu2 %v1038_v10  ;;  %689 = vmatpush.msrb.mxu3 %v1127_v29  ;;  %v1483_v10 = vadd.f32 %v247_v6, %v133_v8  ;;  %v725_v6 = vld [vmem:[%s1692_s4 + $0x10] sm:$0xff]  ;;  %v726_v8 = vld [vmem:[%s1692_s4 + $0x18] sm:$0xff] }
  0xb4   :  { %670 = vmatpush.msrb.mxu2 %v1047_v12  ;;  %690 = vmatpush.msrb.mxu3 %v1145_v33  ;;  %v94_v12 = vpop.f32.mrf.mxu0 }
  0xb5   :  { %252 = vmax.xlane.f32.xlu0 %v1483_v10 }
  0xb6   :  { %671 = vmatpush.msrb.mxu2 %v1066_v16  ;;  %691 = vmatpush.msrb.mxu3 %v1163_v37  ;;  %v135_v16 = vpop.f32.mrf.mxu1 }
  0xb8   :  { %672 = vmatpush.msrb.mxu2 %v1081_v19  ;;  %692 = vmatpush.msrb.mxu3 %v1181_v41  ;;  %v95_v19 = vadd.f32 %v94_v12, %v1414_v13  ;;  %v723_v12 = vld [vmem:[%s1692_s4] sm:$0xff] }
  0xba   :  { %673 = vmatpush.msrb.mxu2 %v1096_v22  ;;  %693 = vmatpush.msrb.mxu3 %v1199_v45  ;;  %v136_v22 = vadd.f32 %v135_v16, %v1480_v1  ;;  %v724_v16 = vld [vmem:[%s1692_s4 + $0x8] sm:$0xff] }
  0xbc   :  { %674 = vmatpush.msrb.mxu2 %v1117_v27  ;;  %694 = vmatpush.msrb.mxu3 %v1226_v51 }
  0xbe   :  { %675 = vmatpush.msrb.mxu2 %v1135_v31  ;;  %695 = vmatpush.msrb.mxu3 %v1236_v53  ;;  %v751_v53 = vld [vmem:[%s1692_s4 + $0xe0] sm:$0xff] }
  0xc0   :  { %676 = vmatpush.msrb.mxu2 %v1153_v35  ;;  %696 = vmatpush.msrb.mxu3 %v1246_v55  ;;  %v97_v35 = vpop.f32.mrf.mxu0  ;;  %v747_v55 = vld [vmem:[%s1692_s4 + $0xc0] sm:$0xff] }
  0xc1   :  { %v138_v36 = vpop.f32.mrf.mxu1 }
  0xc2   :  { %677 = vmatpush.msrb.mxu2 %v1171_v39  ;;  %697 = vmatpush.msrb.mxu3 %v1257_v57  ;;  %v743_v57 = vld [vmem:[%s1692_s4 + $0xa0] sm:$0xff] }
  0xc4   :  { %678 = vmatpush.msrb.mxu2 %v1189_v43  ;;  %698 = vmatpush.msrb.mxu3 %v1268_v59 }
  0xc6   :  { %679 = vmatpush.msrb.mxu2 %v1207_v47  ;;  %699 = vmatpush.msrb.mxu3 %v1279_v61 }
  0xc9   :  { %v100_v37 = vpop.f32.mrf.mxu0 }
  0xca   :  { %v101_v47 = vadd.f32 %v100_v37, %v1414_v13 }
  0xcd   :  { %v141_v38 = vpop.f32.mrf.mxu1 }
  0xce   :  { %v142_v46 = vadd.f32 %v141_v38, %v1480_v1  ;;  %v835_v38 = vld [vmem:[%s1692_s4 + $0xa8] sm:$0xff] }
  0xd5   :  { %v103_v39 = vpop.f32.mrf.mxu0 }
  0xd6   :  { %v104_v60 = vadd.f32 %v103_v39, %v1414_v13 }
  0xd9   :  { %v144_v40 = vpop.f32.mrf.mxu1 }
  0xda   :  { %v145_v59 = vadd.f32 %v144_v40, %v1480_v1  ;;  %v833_v40 = vld [vmem:[%s1692_s4 + $0x98] sm:$0xff] }
  0xdf   :  { %v1498_v41 = vpop.f32.mrf.mxu0 }
 0x12a   :  { %v317_v27 = vpop.f32.mrf.mxu2  ;;  %v337_v31 = vpop.f32.mrf.mxu3 }
 0x12b   :  { %v340_v32 = vadd.f32 %v317_v27, %v95_v19  ;;  %v1488_v34 = vadd.f32 %v337_v31, %v136_v22  ;;  %v845_v19 = vld [vmem:[%s1692_s4 + $0xf8] sm:$0xff]  ;;  %v843_v22 = vld [vmem:[%s1692_s4 + $0xe8] sm:$0xff] }
 0x12c   :  { %v841_v27 = vld [vmem:[%s1692_s4 + $0xd8] sm:$0xff]  ;;  %v839_v31 = vld [vmem:[%s1692_s4 + $0xc8] sm:$0xff] }
 0x12d   :  { %342 = vmax.xlane.f32.xlu0 %v1488_v34  ;;  %407 = vmatmul.f32.vlgmr.msrb.gmra.mxu0 %v340_v32 }
 0x12e   :  { %427 = vmatmul.f32.vlgmr.msrb.gmra.mxu1 %v340_v32  ;;  %755 = vmatpush.msrb.mxu0 %v753_v52  ;;  %v253_v32 = vpop.xlane.xlu0 %252 }
 0x12f   :  { %775 = vmatpush.msrb.mxu1 %v1056_v14  ;;  %v1500_v14 = vpop.f32.mrf.mxu1  ;;  %v254_v37 = vsub.f32 %v1483_v10, %v253_v32 }
 0x130   :  { %756 = vmatpush.msrb.mxu0 %v751_v53  ;;  %v148_v39 = vadd.f32 %v1500_v14, %v1480_v1 }
 0x131   :  { %776 = vmatpush.msrb.mxu1 %v1061_v15  ;;  %v1502_v15 = vpop.f32.mrf.mxu0 }
 0x132   :  { %757 = vmatpush.msrb.mxu0 %v749_v54 }
 0x133   :  { %777 = vmatpush.msrb.mxu1 %v1076_v18 }
 0x134   :  { %758 = vmatpush.msrb.mxu0 %v747_v55 }
 0x135   :  { %778 = vmatpush.msrb.mxu1 %v1091_v21 }
 0x136   :  { %759 = vmatpush.msrb.mxu0 %v745_v56 }
 0x137   :  { %779 = vmatpush.msrb.mxu1 %v1109_v25  ;;  %v1504_v18 = vpop.f32.mrf.mxu1 }
 0x138   :  { %760 = vmatpush.msrb.mxu0 %v743_v57 }
 0x139   :  { %780 = vmatpush.msrb.mxu1 %v1127_v29  ;;  %v1506_v21 = vpop.f32.mrf.mxu0  ;;  %v139_v29 = vadd.f32 %v138_v36, %v1480_v1  ;;  %v837_v36 = vld [vmem:[%s1692_s4 + $0xb8] sm:$0xff] }
 0x13a   :  { %761 = vmatpush.msrb.mxu0 %v741_v58 }
 0x13b   :  { %781 = vmatpush.msrb.mxu1 %v1145_v33  ;;  %v98_v33 = vadd.f32 %v97_v35, %v1414_v13 }
 0x13c   :  { %762 = vmatpush.msrb.mxu0 %v739_v3 }
 0x13d   :  { %782 = vmatpush.msrb.mxu1 %v1552_v5 }
 0x13e   :  { %763 = vmatpush.msrb.mxu0 %v737_v7 }
 0x13f   :  { %v1508_v25 = vpop.f32.mrf.mxu1  ;;  %783 = vmatpush.msrb.mxu1 %v1561_v9 }
 0x140   :  { %764 = vmatpush.msrb.mxu0 %v735_v11 }
 0x141   :  { %784 = vmatpush.msrb.mxu1 %v1570_v17 }
 0x142   :  { %765 = vmatpush.msrb.mxu0 %v733_v20 }
 0x143   :  { %785 = vmatpush.msrb.mxu1 %v1579_v23 }
 0x144   :  { %766 = vmatpush.msrb.mxu0 %v731_v24 }
 0x145   :  { %786 = vmatpush.msrb.mxu1 %v1587_v26 }
 0x146   :  { %767 = vmatpush.msrb.mxu0 %v729_v28 }
 0x147   :  { %787 = vmatpush.msrb.mxu1 %v730_v30 }
 0x148   :  { %768 = vmatpush.msrb.mxu0 %v727_v0 }
 0x149   :  { %788 = vmatpush.msrb.mxu1 %v728_v4 }
 0x14a   :  { %769 = vmatpush.msrb.mxu0 %v725_v6 }
 0x14b   :  { %789 = vmatpush.msrb.mxu1 %v726_v8 }
 0x14c   :  { %770 = vmatpush.msrb.mxu0 %v723_v12 }
 0x14d   :  { %790 = vmatpush.msrb.mxu1 %v724_v16 }
 0x1aa   :  { %v408_v42 = vpop.f32.mrf.mxu0 }
 0x1ab   :  { %v431_v43 = vadd.f32 %v408_v42, %v98_v33  ;;  %v428_v44 = vpop.f32.mrf.mxu1  ;;  %v107_v33 = vadd.f32 %v1498_v41, %v1414_v13 }
 0x1ac   :  { %v1512_v45 = vadd.f32 %v428_v44, %v139_v29  ;;  %v255_v29 = vmul.f32 1.442695, %v254_v37 }
 0x1ad   :  { %498 = vmatmul.f32.vlgmr.msra.gmra.mxu2 %v431_v43  ;;  %518 = vmatmul.f32.vlgmr.msra.gmra.mxu3 %v431_v43 }
 0x1ae   :  { %433 = vmax.xlane.f32.xlu1 %v1512_v45  ;;  %846 = vmatpush.msra.mxu2 %v753_v52  ;;  %924 = vpow2.f32 %v255_v29 }
 0x1af   :  { %866 = vmatpush.msra.mxu3 %v845_v19 }
 0x1b0   :  { %847 = vmatpush.msra.mxu2 %v751_v53  ;;  %v151_v53 = vadd.f32 %v1504_v18, %v1480_v1 }
 0x1b1   :  { %867 = vmatpush.msra.mxu3 %v843_v22 }
 0x1b2   :  { %848 = vmatpush.msra.mxu2 %v749_v54 }
 0x1b3   :  { %868 = vmatpush.msra.mxu3 %v841_v27 }
 0x1b4   :  { %849 = vmatpush.msra.mxu2 %v747_v55  ;;  %v925_v41 = vpop.eup %924  ;;  %v110_v55 = vadd.f32 %v1502_v15, %v1414_v13 }
 0x1b5   :  { %869 = vmatpush.msra.mxu3 %v839_v31 }
 0x1b6   :  { %850 = vmatpush.msra.mxu2 %v745_v56 }
 0x1b7   :  { %870 = vmatpush.msra.mxu3 %v837_v36 }
 0x1b8   :  { %851 = vmatpush.msra.mxu2 %v743_v57 }
 0x1b9   :  { %871 = vmatpush.msra.mxu3 %v835_v38 }
 0x1ba   :  { %852 = vmatpush.msra.mxu2 %v741_v58 }
 0x1bb   :  { %872 = vmatpush.msra.mxu3 %v833_v40 }
 0x1bc   :  { %853 = vmatpush.msra.mxu2 %v739_v3 }
 0x1bd   :  { %873 = vmatpush.msra.mxu3 %v1552_v5 }
 0x1be   :  { %854 = vmatpush.msra.mxu2 %v737_v7 }
 0x1bf   :  { %874 = vmatpush.msra.mxu3 %v1561_v9 }
 0x1c0   :  { %855 = vmatpush.msra.mxu2 %v735_v11 }
 0x1c1   :  { %875 = vmatpush.msra.mxu3 %v1570_v17 }
 0x1c2   :  { %856 = vmatpush.msra.mxu2 %v733_v20 }
 0x1c3   :  { %876 = vmatpush.msra.mxu3 %v1579_v23 }
 0x1c4   :  { %857 = vmatpush.msra.mxu2 %v731_v24 }
 0x1c5   :  { %877 = vmatpush.msra.mxu3 %v1587_v26 }
 0x1c6   :  { %858 = vmatpush.msra.mxu2 %v729_v28  ;;  %v113_v28 = vadd.f32 %v1506_v21, %v1414_v13 }
 0x1c7   :  { %878 = vmatpush.msra.mxu3 %v730_v30  ;;  %v154_v30 = vadd.f32 %v1508_v25, %v1480_v1 }
 0x1c8   :  { %859 = vmatpush.msra.mxu2 %v727_v0 }
 0x1c9   :  { %879 = vmatpush.msra.mxu3 %v728_v4 }
 0x1ca   :  { %860 = vmatpush.msra.mxu2 %v725_v6 }
 0x1cb   :  { %880 = vmatpush.msra.mxu3 %v726_v8 }
 0x1cc   :  { %861 = vmatpush.msra.mxu2 %v723_v12 }
 0x1cd   :  { %881 = vmatpush.msra.mxu3 %v724_v16 }
 0x221   :  { %v1627_v35 = vpop.xlane.xlu1 %433 }
 0x222   :  { %v435_v26 = vsub.f32 %v1512_v45, %v1627_v35 }
 0x224   :  { %v436_v4 = vmul.f32 1.442695, %v435_v26 }
 0x230   :  { %v499_v48 = vpop.f32.mrf.mxu2  ;;  %v519_v49 = vpop.f32.mrf.mxu3 }
 0x231   :  { %v522_v50 = vadd.f32 %v499_v48, %v101_v47  ;;  %v1517_v51 = vadd.f32 %v519_v49, %v142_v46 }
 0x233   :  { %524 = vmax.xlane.f32.xlu1 %v1517_v51  ;;  %589 = vmatmul.f32.vlgmr.msra.gmra.mxu0 %v522_v50 }
 0x234   :  { %609 = vmatmul.f32.vlgmr.msra.gmra.mxu1 %v522_v50 }
 0x2a6   :  { %v525_v43 = vpop.xlane.xlu1 %524 }
 0x2a7   :  { %v526_v14 = vsub.f32 %v1517_v51, %v525_v43  ;;  %v343_v51 = vpop.xlane.xlu0 %342 }
 0x2a8   :  { %v344_v52 = vsub.f32 %v1488_v34, %v343_v51 }
 0x2a9   :  { %v527_v47 = vmul.f32 1.442695, %v526_v14 }
 0x2aa   :  { %v345_v57 = vmul.f32 1.442695, %v344_v52 }
 0x2ab   :  { %926 = vpow2.f32 %v527_v47 }
 0x2b0   :  { %v590_v61 = vpop.f32.mrf.mxu0 }
 0x2b1   :  { %v613_v62 = vadd.f32 %v590_v61, %v104_v60  ;;  %v610_v63 = vpop.f32.mrf.mxu1  ;;  %v927_v48 = vpop.eup %926 }
 0x2b2   :  { %v1543_v2 = vadd.f32 %v610_v63, %v145_v59 }
 0x2b3   :  { %680 = vmatmul.f32.vlgmr.msrb.gmra.mxu2 %v613_v62  ;;  %700 = vmatmul.f32.vlgmr.msrb.gmra.mxu3 %v613_v62 }
 0x2b4   :  { %615 = vmax.xlane.f32.xlu2 %v1543_v2 }
 0x327   :  { %v616_v49 = vpop.xlane.xlu2 %615 }
 0x328   :  { %v617_v34 = vsub.f32 %v1543_v2, %v616_v49 }
 0x32a   :  { %v618_v3 = vmul.f32 1.442695, %v617_v34 }
 0x336   :  { %v681_v42 = vpop.f32.mrf.mxu2  ;;  %v701_v10 = vpop.f32.mrf.mxu3 }
 0x337   :  { %v704_v44 = vadd.f32 %v681_v42, %v107_v33  ;;  %v1643_v46 = vadd.f32 %v701_v10, %v148_v39 }
 0x339   :  { %706 = vmax.xlane.f32.xlu2 %v1643_v46  ;;  %771 = vmatmul.f32.vlgmr.msrb.gmra.mxu0 %v704_v44 }
 0x33a   :  { %791 = vmatmul.f32.vlgmr.msrb.gmra.mxu1 %v704_v44 }
 0x341   :  { %257 = vadd.xlane.f32.xlu2 %v925_v41 }
 0x349   :  { %529 = vadd.xlane.f32.xlu2 %v927_v48 }
 0x3ac   :  { %v707_v50 = vpop.xlane.xlu2 %706 }
 0x3ad   :  { %v708_v13 = vsub.f32 %v1643_v46, %v707_v50 }
 0x3af   :  { %v709_v21 = vmul.f32 1.442695, %v708_v13 }
 0x3b4   :  { %v258_v54 = vpop.xlane.xlu2 %257 }
 0x3b5   :  { %928 = vlog2.f32 %v258_v54 }
 0x3b6   :  { %v772_v56 = vpop.f32.mrf.mxu0  ;;  %930 = vpow2.f32 %v345_v57 }
 0x3b7   :  { %v795_v58 = vadd.f32 %v772_v56, %v110_v55  ;;  %v792_v59 = vpop.f32.mrf.mxu1 }
 0x3b8   :  { %v796_v60 = vadd.f32 %v792_v59, %v151_v53 }
 0x3b9   :  { %862 = vmatmul.f32.vlgmr.msra.gmra.mxu2 %v795_v58  ;;  %882 = vmatmul.f32.vlgmr.msra.gmra.mxu3 %v795_v58 }
 0x3ba   :  { %797 = vmax.xlane.f32.xlu0 %v796_v60 }
 0x3bb   :  { %v929_v61 = vpop.eup %928 }
 0x3bc   :  { %v260_v62 = vmul.f32 0.6931472, %v929_v61  ;;  %v530_v63 = vpop.xlane.xlu2 %529  ;;  %v931_v15 = vpop.eup %930 }
 0x3bd   :  { %932 = vlog2.f32 %v530_v63 }
 0x3be   :  { %v261_v18 = vsub.f32 %v254_v37, %v260_v62  ;;  %934 = vpow2.f32 %v618_v3 }
 0x3c0   :  { %262 = vst [vmem:[%s1697_s5] sm:$0xff] %v261_v18 }
 0x3c2   :  { %347 = vadd.xlane.f32.xlu0 %v931_v15 }
 0x3c3   :  { %v933_v5 = vpop.eup %932 }
 0x3c4   :  { %v532_v7 = vmul.f32 0.6931472, %v933_v5  ;;  %v935_v2 = vpop.eup %934 }
 0x3c6   :  { %v533_v9 = vsub.f32 %v526_v14, %v532_v7 }
 0x3c8   :  { %919 = vst [vmem:[%s1697_s5 + $0x18] sm:$0xff] %v533_v9 }
 0x3ca   :  { %620 = vadd.xlane.f32.xlu0 %v935_v2 }
 0x42d   :  { %v798_v11 = vpop.xlane.xlu0 %797 }
 0x42e   :  { %v799_v17 = vsub.f32 %v796_v60, %v798_v11 }
 0x430   :  { %v800_v20 = vmul.f32 1.442695, %v799_v17 }
 0x432   :  { %936 = vpow2.f32 %v800_v20 }
 0x435   :  { %v348_v23 = vpop.xlane.xlu0 %347 }
 0x436   :  { %938 = vlog2.f32 %v348_v23 }
 0x438   :  { %v937_v24 = vpop.eup %936 }
 0x439   :  { %802 = vadd.xlane.f32.xlu2 %v937_v24 }
 0x43c   :  { %v939_v0 = vpop.eup %938  ;;  %v863_v6 = vpop.f32.mrf.mxu2 }
 0x43d   :  { %v883_v8 = vpop.f32.mrf.mxu3  ;;  %v350_v12 = vmul.f32 0.6931472, %v939_v0  ;;  %v621_v16 = vpop.xlane.xlu0 %620  ;;  %v886_v19 = vadd.f32 %v863_v6, %v113_v28 }
 0x43e   :  { %v887_v22 = vadd.f32 %v883_v8, %v154_v30  ;;  %940 = vlog2.f32 %v621_v16 }
 0x43f   :  { %v351_v27 = vsub.f32 %v344_v52, %v350_v12  ;;  %901 = vst [vmem:[%s1698_s6] sm:$0xff] %v886_v19  ;;  %942 = vpow2.f32 %v436_v4 }
 0x440   :  { %888 = vmax.xlane.f32.xlu1 %v887_v22  ;;  %944 = vpow2.f32 %v709_v21 }
 0x441   :  { %917 = vst [vmem:[%s1697_s5 + $0x8] sm:$0xff] %v351_v27 }
 0x444   :  { %v941_v1 = vpop.eup %940 }
 0x445   :  { %v623_v25 = vmul.f32 0.6931472, %v941_v1  ;;  %v943_v45 = vpop.eup %942 }
 0x446   :  { %v945_v32 = vpop.eup %944 }
 0x447   :  { %v624_v31 = vsub.f32 %v617_v34, %v623_v25 }
 0x448   :  { %438 = vadd.xlane.f32.xlu1 %v943_v45 }
 0x449   :  { %920 = vst [vmem:[%s1697_s5 + $0x20] sm:$0xff] %v624_v31 }
 0x450   :  { %711 = vadd.xlane.f32.xlu1 %v945_v32 }
 0x4ac   :  { %v803_v35 = vpop.xlane.xlu2 %802 }
 0x4ad   :  { %946 = vlog2.f32 %v803_v35 }
 0x4b3   :  { %v889_v36 = vpop.xlane.xlu1 %888  ;;  %v947_v37 = vpop.eup %946 }
 0x4b4   :  { %v890_v38 = vsub.f32 %v887_v22, %v889_v36  ;;  %v805_v39 = vmul.f32 0.6931472, %v947_v37 }
 0x4b6   :  { %v891_v40 = vmul.f32 1.442695, %v890_v38  ;;  %v806_v29 = vsub.f32 %v799_v17, %v805_v39 }
 0x4b8   :  { %948 = vpow2.f32 %v891_v40  ;;  %922 = vst [vmem:[%s1697_s5 + $0x30] sm:$0xff] %v806_v29 }
 0x4bb   :  { %v439_v33 = vpop.xlane.xlu1 %438 }
 0x4bc   :  { %950 = vlog2.f32 %v439_v33 }
 0x4be   :  { %v949_v42 = vpop.eup %948 }
 0x4bf   :  { %893 = vadd.xlane.f32.xlu0 %v949_v42 }
 0x4c2   :  { %v951_v10 = vpop.eup %950 }
 0x4c3   :  { %v441_v43 = vmul.f32 0.6931472, %v951_v10  ;;  %v712_v44 = vpop.xlane.xlu1 %711 }
 0x4c4   :  { %952 = vlog2.f32 %v712_v44 }
 0x4c5   :  { %v442_v46 = vsub.f32 %v435_v26, %v441_v43 }
 0x4c7   :  { %918 = vst [vmem:[%s1697_s5 + $0x10] sm:$0xff] %v442_v46 }
 0x4ca   :  { %v953_v14 = vpop.eup %952 }
 0x4cb   :  { %v714_v41 = vmul.f32 0.6931472, %v953_v14 }
 0x4cd   :  { %v715_v47 = vsub.f32 %v708_v13, %v714_v41 }
 0x4cf   :  { %921 = vst [vmem:[%s1697_s5 + $0x28] sm:$0xff] %v715_v47 }
 0x532   :  { %v894_v48 = vpop.xlane.xlu0 %893 }
 0x533   :  { %954 = vlog2.f32 %v894_v48 }
 0x539   :  { %v955_v49 = vpop.eup %954 }
 0x53a   :  { %v896_v50 = vmul.f32 0.6931472, %v955_v49 }
 0x53c   :  { %v897_v51 = vsub.f32 %v890_v38, %v896_v50 }
 0x53e   :  { %923 = vst [vmem:[%s1697_s5 + $0x38] sm:$0xff] %v897_v51 }

</bundles_post_ra>
